<compile_context>
chip_gen: v6e
topology: v6e:2x2x1
jax: 0.10.0
libtpu: 0.0.40
codegen_flags: <defaults>
</compile_context>

<pallas_src>
import functools

import jax
import jax.numpy as jnp
from jax.experimental import pallas as pl
from jax.experimental.pallas import tpu as pltpu

NUM_OFFSETS = 64


def _round_up(x, m):
    return ((x + m - 1) // m) * m


# --------------------------------- kernels ---------------------------------

def _multilabel_kernel(x_ref, lbl_ref, col_ref, w_ref, out_ref, *,
                       batch, has_remainder):
    """Partial BCE-with-logits (one-hot targets) loss for one batch tile.

    x_ref:   (TB, C) logits tile, C = num_pages + num_offsets
    lbl_ref: (TB, 2) int32; col 0 = page label, col 1 = offset label + num_pages
    col_ref: (1, C)  int32 resident column indices (hoisted iota)
    w_ref:   (C, 1)  f32 resident per-column weight = 1/(B*P) or 1/(B*O)
    out_ref: (1, 8, 128) f32; whole block holds the tile's partial loss
             (already divided by the GLOBAL mean denominators).
    """
    TB, C = x_ref.shape
    x = x_ref[...].astype(jnp.float32)
    col = col_ref[...]                                       # (1, C)
    lbl = lbl_ref[...]
    page_lbl = lbl[:, 0:1]                                   # (TB, 1)
    off_lbl = lbl[:, 1:2]                                    # already + num_pages

    row_valid = None
    if has_remainder:
        i = pl.program_id(0)
        row = jax.lax.broadcasted_iota(jnp.int32, (TB, 1), 0) + i * TB
        row_valid = row < batch                              # (TB, 1)
        # select (not multiply) so garbage/NaN padded rows never reach exp/dot
        x = jnp.where(row_valid, x, 0.0)

    onehot = jnp.logical_or(col == page_lbl, col == off_lbl)  # (TB, C)
    # numerically-stable BCE with logits: max(x,0) - x*y + log1p(exp(-|x|));
    # the x*y term uses a select instead of bool->f32 cast + multiply.
    elt = (jnp.maximum(x, 0.0) - jnp.where(onehot, x, 0.0)
           + jnp.log1p(jnp.exp(-jnp.abs(x))))

    # weighted row sums on the otherwise-idle MXU (f32 multi-pass precision)
    row_sum = jnp.dot(elt, w_ref[...],
                      preferred_element_type=jnp.float32,
                      precision=jax.lax.Precision.HIGHEST)    # (TB, 1)
    if has_remainder:
        row_sum = jnp.where(row_valid, row_sum, 0.0)

    out_ref[...] = jnp.zeros(out_ref.shape, jnp.float32) + jnp.sum(row_sum)


def _ce_kernel(x_ref, lbl_ref, col_ref, out_ref, *,
               num_pages, batch, has_remainder):
    """Partial softmax cross-entropy (page CE + offset CE) for one batch tile."""
    TB, C = x_ref.shape
    P = num_pages
    hi = jax.lax.Precision.HIGHEST

    x = x_ref[...].astype(jnp.float32)
    col = col_ref[...]
    lbl = lbl_ref[...]
    page_lbl = lbl[:, 0:1]
    off_lbl = lbl[:, 1:2]                                    # already + num_pages

    row_valid = None
    if has_remainder:
        i = pl.program_id(0)
        row = jax.lax.broadcasted_iota(jnp.int32, (TB, 1), 0) + i * TB
        row_valid = row < batch
        x = jnp.where(row_valid, x, 0.0)

    if P % 128 == 0:
        # 128-lane-aligned segments: free static slices, half-width reductions
        xp = x[:, :P]
        xo = x[:, P:]
        page_max = jnp.max(xp, axis=-1, keepdims=True)
        off_max = jnp.max(xo, axis=-1, keepdims=True)
        ep = jnp.exp(xp - page_max)
        eo = jnp.exp(xo - off_max)
        page_se = jnp.dot(ep, jnp.ones((P, 1), jnp.float32),
                          preferred_element_type=jnp.float32, precision=hi)
        off_se = jnp.dot(eo, jnp.ones((C - P, 1), jnp.float32),
                         preferred_element_type=jnp.float32, precision=hi)
    else:
        # fallback for unaligned num_pages: iota-mask segmentation
        is_page = col < P                                    # (1, C) broadcast
        neg_inf = jnp.float32(-jnp.inf)
        page_max = jnp.max(jnp.where(is_page, x, neg_inf), axis=-1, keepdims=True)
        off_max = jnp.max(jnp.where(is_page, neg_inf, x), axis=-1, keepdims=True)
        e = jnp.exp(x - jnp.where(is_page, page_max, off_max))
        ones_c = jnp.ones((C, 1), jnp.float32)
        page_se = jnp.dot(jnp.where(is_page, e, 0.0), ones_c,
                          preferred_element_type=jnp.float32, precision=hi)
        off_se = jnp.dot(jnp.where(is_page, 0.0, e), ones_c,
                         preferred_element_type=jnp.float32, precision=hi)

    onehot = jnp.logical_or(col == page_lbl, col == off_lbl)
    picked = jnp.dot(jnp.where(onehot, x, 0.0), jnp.ones((C, 1), jnp.float32),
                     preferred_element_type=jnp.float32, precision=hi)  # (TB,1)

    per_row = (page_max + jnp.log(page_se)) + (off_max + jnp.log(off_se)) - picked
    if has_remainder:
        per_row = jnp.where(row_valid, per_row, 0.0)

    out_ref[...] = (jnp.zeros(out_ref.shape, jnp.float32)
                    + jnp.sum(per_row) * (1.0 / float(batch)))


# ------------------------------ tile selection ------------------------------

def _vmem_block_budget_bytes():
    # v7x has only 64 MiB physical VMEM per TC (32 MiB scoped default) -> stay
    # at 6 MiB of double-buffered logits; v5e/v6e (128 MiB) can afford ~14 MiB
    # so bigger blocks amortize the ~0.35us per-grid-step overhead.
    try:
        cap = getattr(pltpu.get_tpu_info(), "vmem_capacity_bytes", None)
    except Exception:
        cap = None
    if cap is not None and cap > 64 * 1024 * 1024:
        return 14 * 1024 * 1024
    return 6 * 1024 * 1024


def _pick_block_rows(B, C, itemsize):
    row_bytes = C * itemsize + 2 * 4
    cap = (_vmem_block_budget_bytes() // (2 * row_bytes)) // 8 * 8
    cap = max(8, min(4096, cap))
    if B < 16:
        # tiny batch: a single tile; not enough rows to feed two cores anyway
        return min(cap, _round_up(B, 8))
    # never emit a 1-step grid for B >= 16: target 2-8 tiles so the "parallel"
    # batch axis can be sharded across both v7x TensorCores.
    target_tiles = 8 if B >= 512 else (4 if B >= 64 else 2)
    tb = min(cap, _round_up(pl.cdiv(B, target_tiles), 8))
    while tb > 8 and pl.cdiv(B, tb) < 2:
        tb -= 8
    return max(8, tb)


# --------------------------------- wrapper ----------------------------------

def hierarchical_ce_loss(y_pred, y_true_page, y_true_offset, *,
                         multi_label, num_offsets=NUM_OFFSETS, block_rows=None):
    """Equivalent of HierarchicalCrossEntropyWithLogitsLoss(multi_label).forward.

    y_pred:        [B, C] logits (C = num_pages + num_offsets); f32 or bf16 in
                   HBM (bf16 recommended on v5e/v6e; upcast happens in-kernel).
    y_true_page:   integer page labels, any shape reshapeable to [B]
    y_true_offset: integer offset labels, any shape reshapeable to [B]
    """
    B, C = y_pred.shape
    P = C - num_offsets
    itemsize = jnp.dtype(y_pred.dtype).itemsize

    # pack both labels into one (B, 2) int32 array; offset column pre-shifted
    # to its absolute logit column so the kernel does a single compare pair.
    page_lbl = y_true_page.reshape(B).astype(jnp.int32)
    off_lbl = y_true_offset.reshape(B).astype(jnp.int32) + P
    labels = jnp.stack([page_lbl, off_lbl], axis=1)            # (B, 2)

    # grid-invariant per-column tensors, kept VMEM-resident across the grid
    col_row = jnp.arange(C, dtype=jnp.int32).reshape(1, C)

    TB = _pick_block_rows(B, C, itemsize) if block_rows is None else block_rows
    num_tiles = pl.cdiv(B, TB)
    has_remainder = (B % TB) != 0

    in_arrays = [y_pred, labels, col_row]
    in_specs = [
        pl.BlockSpec((TB, C), lambda i: (i, 0)),
        pl.BlockSpec((TB, 2), lambda i: (i, 0)),
        pl.BlockSpec((1, C), lambda i: (0, 0)),                # resident
    ]

    if multi_label:
        inv_bp = 1.0 / float(B * P)
        inv_bo = 1.0 / float(B * num_offsets)
        w_col = jnp.where(jnp.arange(C) < P, inv_bp, inv_bo)
        w_col = w_col.astype(jnp.float32).reshape(C, 1)
        in_arrays.append(w_col)
        in_specs.append(pl.BlockSpec((C, 1), lambda i: (0, 0)))  # resident
        kernel = functools.partial(_multilabel_kernel, batch=B,
                                   has_remainder=has_remainder)
        transcendentals = int(2 * B * C)
    else:
        kernel = functools.partial(_ce_kernel, num_pages=P, batch=B,
                                   has_remainder=has_remainder)
        transcendentals = int(B * C + 2 * B)

    cost = pl.CostEstimate(
        flops=int(8 * B * C),
        transcendentals=transcendentals,
        bytes_accessed=int(B * C * itemsize + B * 2 * 4
                           + num_tiles * 8 * 128 * 4 + 2 * C * 4),
    )

    # NOTE(v7x): if a trace ever shows one TensorCore idle despite "parallel",
    # switch this axis to pltpu.CORE_PARALLEL (or add an explicit core axis).
    partials = pl.pallas_call(
        kernel,
        grid=(num_tiles,),
        in_specs=in_specs,
        out_specs=pl.BlockSpec((1, 8, 128), lambda i: (i, 0, 0)),
        out_shape=jax.ShapeDtypeStruct((num_tiles, 8, 128), jnp.float32),
        compiler_params=pltpu.CompilerParams(
            dimension_semantics=("parallel",),
            vmem_limit_bytes=32 * 1024 * 1024,
        ),
        cost_estimate=cost,
    )(*in_arrays)

    # tiny cross-tile reduction of the per-tile partial losses
    return jnp.sum(partials[:, 0, 0])


# ------------------------------ pure-JAX refs -------------------------------

def _ref_multilabel(y_pred, page_lbl, off_lbl, num_offsets):
    P = y_pred.shape[-1] - num_offsets
    yp = jax.nn.one_hot(page_lbl.reshape(-1), P, dtype=jnp.float32)
    yo = jax.nn.one_hot(off_lbl.reshape(-1), num_offsets, dtype=jnp.float32)

    def bce(x, y):
        x = x.astype(jnp.float32)
        return jnp.mean(jnp.maximum(x, 0.0) - x * y + jnp.log1p(jnp.exp(-jnp.abs(x))))

    return bce(y_pred[:, :P], yp) + bce(y_pred[:, P:], yo)


def _ref_ce(y_pred, page_lbl, off_lbl, num_offsets):
    P = y_pred.shape[-1] - num_offsets

    def ce(x, lbl):
        x = x.astype(jnp.float32)
        lse = jax.scipy.special.logsumexp(x, axis=-1)
        picked = jnp.take_along_axis(x, lbl.reshape(-1, 1), axis=-1)[:, 0]
        return jnp.mean(lse - picked)

    return ce(y_pred[:, :P], page_lbl.reshape(-1)) + ce(y_pred[:, P:], off_lbl.reshape(-1))


# ----------------------------------- main -----------------------------------

if __name__ == "__main__":
    key = jax.random.PRNGKey(0)

    cases = [
        # (batch, num_pages, forced block_rows, logits dtype)
        (8, 128, None, jnp.float32),     # tiny batch, 128-aligned CE fast path
        (13, 128, 8, jnp.float32),       # multi-tile + remainder-row masking
        (32, 120, None, jnp.bfloat16),   # auto >=2 tiles, unaligned fallback, bf16 HBM
    ]

    for B, num_pages, forced_tb, dtype in cases:
        C = num_pages + NUM_OFFSETS
        k1, k2, k3 = jax.random.split(jax.random.fold_in(key, B * 1000 + num_pages), 3)
        y_pred = jax.random.normal(k1, (B, C), dtype=jnp.float32).astype(dtype)
        # y_true[0] / y_true[1] as the multi_label path expects: [B, 1, 1] ints
        y_page_true = jax.random.randint(k2, (B, 1, 1), 0, num_pages, dtype=jnp.int32)
        y_off_true = jax.random.randint(k3, (B, 1, 1), 0, NUM_OFFSETS, dtype=jnp.int32)

        # multi_label=True path (BCE-with-logits on one-hot targets)
        loss_ml = hierarchical_ce_loss(y_pred, y_page_true, y_off_true,
                                       multi_label=True, num_offsets=NUM_OFFSETS,
                                       block_rows=forced_tb)
        jax.block_until_ready(loss_ml)
        ref_ml = _ref_multilabel(y_pred, y_page_true, y_off_true, NUM_OFFSETS)
        assert jnp.allclose(loss_ml, ref_ml, rtol=1e-5, atol=2e-5), \
            (B, num_pages, loss_ml, ref_ml)

        # multi_label=False path (softmax cross-entropy)
        loss_ce = hierarchical_ce_loss(y_pred, y_page_true[:, :, 0], y_off_true[:, :, 0],
                                       multi_label=False, num_offsets=NUM_OFFSETS,
                                       block_rows=forced_tb)
        jax.block_until_ready(loss_ce)
        ref_ce = _ref_ce(y_pred, y_page_true, y_off_true, NUM_OFFSETS)
        assert jnp.allclose(loss_ce, ref_ce, rtol=1e-5, atol=2e-5), \
            (B, num_pages, loss_ce, ref_ce)

    print("KERNEL_OK")
</pallas_src>

<mosaic_0001>
module attributes {stable_mosaic.version = 11 : i64} {
  func.func @_multilabel_kernel(%arg0: i32, %arg1: memref<8x192xf32, #tpu.memory_space<vmem>>, %arg2: memref<8x2xi32, #tpu.memory_space<vmem>>, %arg3: memref<1x192xi32, #tpu.memory_space<vmem>>, %arg4: memref<192x1xf32, #tpu.memory_space<vmem>>, %arg5: memref<1x8x128xf32, #tpu.memory_space<vmem>>) attributes {dimension_semantics = [#tpu.dimension_semantics<parallel>], iteration_bounds = array<i64: 1>, scalar_prefetch = 0 : i64, scratch_operands = 0 : i64, tpu.core_type = #tpu.core_type<tc>, window_params = [{transform_indices = @transform_0, window_bounds = array<i64: 8, 192>}, {transform_indices = @transform_1, window_bounds = array<i64: 8, 2>}, {pipeline_mode = #tpu.pipeline_mode<synchronous>, transform_indices = @transform_2, window_bounds = array<i64: 1, 192>}, {pipeline_mode = #tpu.pipeline_mode<synchronous>, transform_indices = @transform_3, window_bounds = array<i64: 192, 1>}, {transform_indices = @transform_4, window_bounds = array<i64: 1, 8, 128>}]} {
    %c0 = arith.constant 0 : index
    %c0_0 = arith.constant 0 : index
    %0 = vector.load %arg1[%c0, %c0_0] : memref<8x192xf32, #tpu.memory_space<vmem>>, vector<8x192xf32>
    %c0_1 = arith.constant 0 : index
    %c0_2 = arith.constant 0 : index
    %1 = vector.load %arg3[%c0_1, %c0_2] : memref<1x192xi32, #tpu.memory_space<vmem>>, vector<1x192xi32>
    %c0_3 = arith.constant 0 : index
    %c0_4 = arith.constant 0 : index
    %2 = vector.load %arg2[%c0_3, %c0_4] : memref<8x2xi32, #tpu.memory_space<vmem>>, vector<8x2xi32>
    %3 = vector.extract_strided_slice %2 {offsets = [0, 0], sizes = [8, 1], strides = [1, 1]} : vector<8x2xi32> to vector<8x1xi32>
    %4 = vector.extract_strided_slice %2 {offsets = [0, 1], sizes = [8, 1], strides = [1, 1]} : vector<8x2xi32> to vector<8x1xi32>
    %5 = vector.broadcast %1 : vector<1x192xi32> to vector<8x192xi32>
    %6 = vector.broadcast %3 : vector<8x1xi32> to vector<8x192xi32>
    %7 = arith.cmpi eq, %5, %6 : vector<8x192xi32>
    %8 = vector.broadcast %1 : vector<1x192xi32> to vector<8x192xi32>
    %9 = vector.broadcast %4 : vector<8x1xi32> to vector<8x192xi32>
    %10 = arith.cmpi eq, %8, %9 : vector<8x192xi32>
    %11 = arith.ori %7, %10 : vector<8x192xi1>
    %cst = arith.constant 0.000000e+00 : f32
    %12 = vector.broadcast %cst : f32 to vector<8x192xf32>
    %13 = arith.maximumf %0, %12 : vector<8x192xf32>
    %cst_5 = arith.constant 0.000000e+00 : f32
    %14 = vector.broadcast %cst_5 : f32 to vector<8x192xf32>
    %15 = arith.select %11, %0, %14 : vector<8x192xi1>, vector<8x192xf32>
    %16 = arith.subf %13, %15 : vector<8x192xf32>
    %17 = math.absf %0 : vector<8x192xf32>
    %cst_6 = arith.constant 0.000000e+00 : f32
    %18 = vector.broadcast %cst_6 : f32 to vector<8x192xf32>
    %19 = arith.subf %18, %17 : vector<8x192xf32>
    %20 = math.exp %19 : vector<8x192xf32>
    %21 = math.log1p %20 : vector<8x192xf32>
    %22 = arith.addf %16, %21 : vector<8x192xf32>
    %c0_7 = arith.constant 0 : index
    %c0_8 = arith.constant 0 : index
    %23 = vector.load %arg4[%c0_7, %c0_8] : memref<192x1xf32, #tpu.memory_space<vmem>>, vector<192x1xf32>
    %cst_9 = arith.constant dense<0.000000e+00> : vector<8x1xf32>
    %24 = tpu.matmul %22, %23, %cst_9 {dimension_numbers = #tpu.dot_dimension_numbers<[1], [0], [0], [1], [0, 0, 1, 1], [], []>, precision = #tpu.contract_precision<fp32>} : vector<8x192xf32>, vector<192x1xf32>, vector<8x1xf32> -> vector<8x1xf32>
    %cst_10 = arith.constant 0.000000e+00 : f32
    %25 = vector.broadcast %cst_10 : f32 to vector<1x8x128xf32>
    %26 = vector.shape_cast %24 : vector<8x1xf32> to vector<1x8x1xf32>
    %cst_11 = arith.constant dense<0.000000e+00> : vector<1xf32>
    %27 = vector.multi_reduction <add>, %26, %cst_11 [1, 2] : vector<1x8x1xf32> to vector<1xf32>
    %28 = vector.shape_cast %27 : vector<1xf32> to vector<1x1x1xf32>
    %29 = vector.extract %28[0, 0, 0] : f32 from vector<1x1x1xf32>
    %30 = vector.broadcast %29 : f32 to vector<1x8x128xf32>
    %31 = arith.addf %25, %30 : vector<1x8x128xf32>
    %c0_12 = arith.constant 0 : index
    %c0_13 = arith.constant 0 : index
    %c0_14 = arith.constant 0 : index
    %32 = vector.load %arg5[%c0_12, %c0_13, %c0_14] : memref<1x8x128xf32, #tpu.memory_space<vmem>>, vector<1x8x128xf32>
    tpu.vector_store %arg5[%c0_12, %c0_13, %c0_14], %31 {strides = array<i32>} : memref<1x8x128xf32, #tpu.memory_space<vmem>>, vector<1x8x128xf32>,
    return
  }
  func.func @transform_0(%arg0: i32) -> (i32, i32) {
    %c0_i32 = arith.constant 0 : i32
    %c0_i32_0 = arith.constant 0 : i32
    return %arg0, %c0_i32 : i32, i32
  }
  func.func @transform_1(%arg0: i32) -> (i32, i32) {
    %c0_i32 = arith.constant 0 : i32
    %c0_i32_0 = arith.constant 0 : i32
    return %arg0, %c0_i32 : i32, i32
  }
  func.func @transform_2(%arg0: i32) -> (i32, i32) {
    %c0_i32 = arith.constant 0 : i32
    %c0_i32_0 = arith.constant 0 : i32
    %c0_i32_1 = arith.constant 0 : i32
    return %c0_i32, %c0_i32_0 : i32, i32
  }
  func.func @transform_3(%arg0: i32) -> (i32, i32) {
    %c0_i32 = arith.constant 0 : i32
    %c0_i32_0 = arith.constant 0 : i32
    %c0_i32_1 = arith.constant 0 : i32
    return %c0_i32, %c0_i32_0 : i32, i32
  }
  func.func @transform_4(%arg0: i32) -> (i32, i32, i32) {
    %c0_i32 = arith.constant 0 : i32
    %c0_i32_0 = arith.constant 0 : i32
    %c0_i32_1 = arith.constant 0 : i32
    return %arg0, %c0_i32, %c0_i32_0 : i32, i32, i32
  }
}

</mosaic_0001>

<bundles_post_ra>
// kernel: tpu_custom_call.1
= control target key start
LH: loop header
LB: loop body
LE: loop exit
PB: predicated region body
PF: predicated region fallthrough
CT: control target
= control target key end

     0   :  { %v928_v3 = vmov 0   ;;  %v1604_v4 = vmov 0.0   ;;  %v930_v27 = vmov 1   ;;  %s1575_s0 = inlined_call_operand.vmem [shape: f32[8,192], index: 0, kind: input, shape index: {}]   ;;  %s1576_s1 = inlined_call_operand.vmem [shape: s32[8,2], index: 1, kind: input, shape index: {}]   ;;  %s1577_s2 = inlined_call_operand.vmem [shape: s32[1,192], index: 2, kind: input, shape index: {}]   ;;  %s1578_s3 = inlined_call_operand.vmem [shape: f32[192,1], index: 3, kind: input, shape index: {}]   ;;  %s1579_s4 = inlined_call_operand.hbm [shape: f32[1,8,128], index: 4, kind: output, shape index: {}]  }
   0x1   :  { %v21_v0 = vld [vmem:[%s1576_s1] sm:$0xff]  ;;  %v91_v1 = vld [vmem:[%s1578_s3 + $0x78] sm:$0xff]  ;;  %v90_v2 = vld [vmem:[%s1578_s3 + $0x70] sm:$0xff]  ;;  %896 = vset.pattern.permute.xlu0 %v928_v3  ;;  %208 = vmatprep.subr.mxu1 %v1604_v4 }
   0x2   :  { %v967_v5 = vand.u32 4294901760, %v91_v1  ;;  %v969_v6 = vand.u32 4294901760, %v90_v2  ;;  %v89_v7 = vld [vmem:[%s1578_s3 + $0x68] sm:$0xff]  ;;  %v88_v8 = vld [vmem:[%s1578_s3 + $0x60] sm:$0xff]  ;;  %v87_v9 = vld [vmem:[%s1578_s3 + $0x58] sm:$0xff]  ;;  %31 = vperm.xlu0 %896, %v21_v0   ;;  %104 = vmatprep.subr.mxu0 %v1604_v4 }
   0x3   :  { %v980_v10 = vand.u32 4294901760, %v89_v7  ;;  %v982_v11 = vand.u32 4294901760, %v88_v8  ;;  %v985_v12 = vand.u32 4294901760, %v87_v9  ;;  %v86_v13 = vld [vmem:[%s1578_s3 + $0x50] sm:$0xff]  ;;  %v85_v14 = vld [vmem:[%s1578_s3 + $0x48] sm:$0xff]  ;;  %v84_v15 = vld [vmem:[%s1578_s3 + $0x40] sm:$0xff] }
   0x4   :  { %v997_v16 = vsub.f32 %v91_v1, %v967_v5  ;;  %v1000_v17 = vsub.f32 %v90_v2, %v969_v6  ;;  %106 = vmatpush1.msra.mxu0 %v967_v5  ;;  %v1003_v18 = vand.u32 4294901760, %v86_v13  ;;  %v1005_v19 = vand.u32 4294901760, %v85_v14  ;;  %v83_v37 = vld [vmem:[%s1578_s3 + $0x38] sm:$0xff]  ;;  %v82_v38 = vld [vmem:[%s1578_s3 + $0x30] sm:$0xff]  ;;  %v81_v42 = vld [vmem:[%s1578_s3 + $0x28] sm:$0xff] }
   0x5   :  { %v1008_v20 = vsub.f32 %v89_v7, %v980_v10  ;;  %v1011_v21 = vsub.f32 %v88_v8, %v982_v11  ;;  %v1014_v22 = vsub.f32 %v87_v9, %v985_v12  ;;  %107 = vmatprep.subr.mxu0 %v1604_v4  ;;  %v1017_v23 = vand.u32 4294901760, %v84_v15 }
   0x6   :  { %v1603_v24 = vand.u32 4294901760, %v997_v16  ;;  %v1602_v25 = vand.u32 4294901760, %v1000_v17  ;;  %109 = vmatpush1.msra.mxu0 %v969_v6  ;;  %v1023_v26 = vsub.f32 %v86_v13, %v1003_v18  ;;  %897 = vset.pattern.permute.xlu0 %v930_v27  ;;  %v1029_v30 = vsub.f32 %v85_v14, %v1005_v19 }
   0x7   :  { %v1601_v28 = vand.u32 4294901760, %v1008_v20  ;;  %v1600_v29 = vand.u32 4294901760, %v1011_v21  ;;  %110 = vmatprep.subr.mxu0 %v1604_v4  ;;  %36 = vperm.xlu0 %897, %v21_v0   ;;  %v1593_v33 = vand.u32 4294901760, %v1014_v22  ;;  %v1045_v36 = vsub.f32 %v84_v15, %v1017_v23 }
   0x8   :  { %v212_v31 = vsub.f32 %v997_v16, %v1603_v24  ;;  %v219_v32 = vsub.f32 %v1000_v17, %v1602_v25  ;;  %112 = vmatpush1.msra.mxu0 %v980_v10  ;;  %v1591_v35 = vand.u32 4294901760, %v1023_v26 }
   0x9   :  { %v226_v34 = vsub.f32 %v1008_v20, %v1601_v28  ;;  %113 = vmatprep.subr.mxu0 %v1604_v4  ;;  %v233_v41 = vsub.f32 %v1011_v21, %v1600_v29 }
   0xa   :  { %v213_v39 = vand.u32 4294901760, %v212_v31  ;;  %v220_v40 = vand.u32 4294901760, %v219_v32  ;;  %115 = vmatpush1.msra.mxu0 %v982_v11 }
   0xb   :  { %9 = vsyncpa [#allocation3], 0  ;;  %v1589_v43 = vand.u32 4294901760, %v1029_v30  ;;  %116 = vmatprep.subr.mxu0 %v1604_v4  ;;  %v80_v44 = vld [vmem:[%s1578_s3 + $0x20] sm:$0xff]  ;;  %v227_v45 = vand.u32 4294901760, %v226_v34  ;;  %v240_v46 = vsub.f32 %v1014_v22, %v1593_v33  ;;  %v1069_v47 = vand.u32 4294901760, %v83_v37 }
   0xc   :  { %214 = vmatpush1.msra.mxu1 %v213_v39  ;;  %118 = vmatpush1.msra.mxu0 %v985_v12  ;;  %v1071_v48 = vand.u32 4294901760, %v82_v38  ;;  %v247_v49 = vsub.f32 %v1023_v26, %v1591_v35  ;;  %v1588_v50 = vand.u32 4294901760, %v1045_v36  ;;  %v1079_v51 = vand.u32 4294901760, %v81_v42  ;;  %v79_v52 = vld [vmem:[%s1578_s3 + $0x18] sm:$0xff]  ;;  %v78_v58 = vld [vmem:[%s1578_s3 + $0x10] sm:$0xff]  ;;  %v77_v63 = vld [vmem:[%s1578_s3 + $0x8] sm:$0xff] }
   0xd   :  { %215 = vmatprep.subr.mxu1 %v1604_v4  ;;  %119 = vmatprep.subr.mxu0 %v1604_v4  ;;  %v234_v53 = vand.u32 4294901760, %v233_v41  ;;  %v1085_v54 = vsub.f32 %v83_v37, %v1069_v47  ;;  %v1091_v56 = vand.u32 4294901760, %v80_v44  ;;  %v254_v57 = vsub.f32 %v1029_v30, %v1589_v43  ;;  %v76_v8 = vld [vmem:[%s1578_s3] sm:$0xff]  ;;  %v99_v32 = vld [vmem:[%s1578_s3 + $0xb8] sm:$0xff]  ;;  %v98_v41 = vld [vmem:[%s1578_s3 + $0xb0] sm:$0xff] }
   0xe   :  { %221 = vmatpush1.msra.mxu1 %v220_v40  ;;  %121 = vmatpush1.msra.mxu0 %v1003_v18  ;;  %v1089_v55 = vsub.f32 %v82_v38, %v1071_v48  ;;  %v241_v59 = vand.u32 4294901760, %v240_v46  ;;  %v1104_v61 = vsub.f32 %v81_v42, %v1079_v51  ;;  %v1106_v62 = vand.u32 4294901760, %v79_v52 }
   0xf   :  { %222 = vmatprep.subr.mxu1 %v1604_v4  ;;  %122 = vmatprep.subr.mxu0 %v1604_v4  ;;  %v1586_v60 = vand.u32 4294901760, %v1085_v54  ;;  %v261_v0 = vsub.f32 %v1045_v36, %v1588_v50  ;;  %v248_v1 = vand.u32 4294901760, %v247_v49  ;;  %v1119_v3 = vsub.f32 %v80_v44, %v1091_v56  ;;  %v92_v50 = vld [vmem:[%s1578_s3 + $0x80] sm:$0xff] }
  0x10   :  { %228 = vmatpush1.msra.mxu1 %v227_v45  ;;  %124 = vmatpush1.msra.mxu0 %v1005_v19  ;;  %v1585_v2 = vand.u32 4294901760, %v1089_v55  ;;  %v1121_v7 = vand.u32 4294901760, %v78_v58  ;;  %v1128_v9 = vand.u32 4294901760, %v77_v63  ;;  %v255_v13 = vand.u32 4294901760, %v254_v57 }
  0x11   :  { %229 = vmatprep.subr.mxu1 %v1604_v4  ;;  %125 = vmatprep.subr.mxu0 %v1604_v4  ;;  %v268_v14 = vsub.f32 %v1085_v54, %v1586_v60  ;;  %v1583_v15 = vand.u32 4294901760, %v1104_v61  ;;  %v1136_v27 = vsub.f32 %v79_v52, %v1106_v62  ;;  %v1140_v31 = vand.u32 4294901760, %v76_v8  ;;  %v97_v52 = vld [vmem:[%s1578_s3 + $0xa8] sm:$0xff] }
  0x12   :  { %235 = vmatpush1.msra.mxu1 %v234_v53  ;;  %127 = vmatpush1.msra.mxu0 %v1017_v23  ;;  %v262_v34 = vand.u32 4294901760, %v261_v0  ;;  %v275_v37 = vsub.f32 %v1089_v55, %v1585_v2  ;;  %v1581_v38 = vand.u32 4294901760, %v1119_v3  ;;  %v1151_v39 = vsub.f32 %v78_v58, %v1121_v7  ;;  %v96_v0 = vld [vmem:[%s1578_s3 + $0xa0] sm:$0xff] }
  0x13   :  { %236 = vmatprep.subr.mxu1 %v1604_v4  ;;  %128 = vmatprep.subr.mxu0 %v1604_v4  ;;  %v1156_v40 = vsub.f32 %v77_v63, %v1128_v9  ;;  %v269_v42 = vand.u32 4294901760, %v268_v14  ;;  %v282_v44 = vsub.f32 %v1104_v61, %v1583_v15  ;;  %v1580_v45 = vand.u32 4294901760, %v1136_v27 }
  0x14   :  { %242 = vmatpush1.msra.mxu1 %v241_v59  ;;  %130 = vmatpush1.msra.mxu0 %v1069_v47  ;;  %v1166_v46 = vand.u32 4294901760, %v99_v32  ;;  %v1171_v49 = vsub.f32 %v76_v8, %v1140_v31  ;;  %v276_v53 = vand.u32 4294901760, %v275_v37  ;;  %v289_v57 = vsub.f32 %v1119_v3, %v1581_v38  ;;  %v95_v37 = vld [vmem:[%s1578_s3 + $0x98] sm:$0xff] }
  0x15   :  { %243 = vmatprep.subr.mxu1 %v1604_v4  ;;  %131 = vmatprep.subr.mxu0 %v1604_v4  ;;  %v1582_v58 = vand.u32 4294901760, %v1151_v39  ;;  %v1181_v59 = vand.u32 4294901760, %v98_v41  ;;  %v1584_v63 = vand.u32 4294901760, %v1156_v40  ;;  %v296_v8 = vsub.f32 %v1136_v27, %v1580_v45 }
  0x16   :  { %249 = vmatpush1.msra.mxu1 %v248_v1  ;;  %133 = vmatpush1.msra.mxu0 %v1071_v48  ;;  %v283_v1 = vand.u32 4294901760, %v282_v44  ;;  %v1196_v14 = vand.u32 4294901760, %v97_v52  ;;  %v1211_v45 = vand.u32 4294901760, %v96_v0  ;;  %v1226_v15 = vand.u32 4294901760, %v95_v37 }
  0x17   :  { %250 = vmatprep.subr.mxu1 %v1604_v4  ;;  %134 = vmatprep.subr.mxu0 %v1604_v4  ;;  %v303_v44 = vsub.f32 %v1151_v39, %v1582_v58  ;;  %v310_v38 = vsub.f32 %v1156_v40, %v1584_v63  ;;  %v22_v28 = vlaneseq  ;;  %vm100_vm8 = vcmask 523264  }
  0x18   :  { %256 = vmatpush1.msra.mxu1 %v255_v13  ;;  %136 = vmatpush1.msra.mxu0 %v1079_v51  ;;  %v1194_v13 = vsub.f32 %v99_v32, %v1166_v46  ;;  %v1209_v32 = vsub.f32 %v98_v41, %v1181_v59  ;;  %v1224_v41 = vsub.f32 %v97_v52, %v1196_v14  ;;  %vm862_vm9 = vcmask 7168  }
  0x19   :  { %257 = vmatprep.subr.mxu1 %v1604_v4  ;;  %137 = vmatprep.subr.mxu0 %v1604_v4  ;;  %v1239_v52 = vsub.f32 %v96_v0, %v1211_v45  ;;  %v1254_v0 = vsub.f32 %v95_v37, %v1226_v15  ;;  %v1268_v37 = vand.u32 4294901760, %v92_v50  ;;  %v23_v25 = vshrl.u32 %v22_v28, 7 }
  0x1a   :  { %263 = vmatpush1.msra.mxu1 %v262_v34  ;;  %139 = vmatpush1.msra.mxu0 %v1091_v56  ;;  %v1587_v34 = vand.u32 4294901760, %v1171_v49  ;;  %1626 = vst [vmem:[#allocation5_spill] sm:$0xff] %v1209_v32  ;;  %v1590_v58 = vand.u32 4294901760, %v1194_v13  ;;  %1627 = vst [vmem:[#allocation6_spill] sm:$0xff] %v1224_v41  ;;  %v1592_v2 = vand.u32 4294901760, %v1209_v32 }
  0x1b   :  { %264 = vmatprep.subr.mxu1 %v1604_v4  ;;  %140 = vmatprep.subr.mxu0 %v1604_v4  ;;  %1628 = vst [vmem:[#allocation7_spill] sm:$0xff] %v1239_v52  ;;  %1630 = vst [vmem:[#allocation9_spill] sm:$0xff] %v1254_v0 }
  0x1c   :  { %270 = vmatpush1.msra.mxu1 %v269_v42  ;;  %142 = vmatpush1.msra.mxu0 %v1106_v62  ;;  %v290_v42 = vand.u32 4294901760, %v289_v57  ;;  %v297_v57 = vand.u32 4294901760, %v296_v8  ;;  %v317_v63 = vsub.f32 %v1171_v49, %v1587_v34  ;;  %v304_v8 = vand.u32 4294901760, %v303_v44  ;;  %1633 = vst [vmem:[#allocation12_spill] sm:$0xff] %v1268_v37 }
  0x1d   :  { %271 = vmatprep.subr.mxu1 %v1604_v4  ;;  %143 = vmatprep.subr.mxu0 %v1604_v4  ;;  %v311_v34 = vand.u32 4294901760, %v310_v38  ;;  %v1594_v44 = vand.u32 4294901760, %v1224_v41 }
  0x1e   :  { %277 = vmatpush1.msra.mxu1 %v276_v53  ;;  %145 = vmatpush1.msra.mxu0 %v1121_v7  ;;  %v94_v53 = vld [vmem:[%s1578_s3 + $0x90] sm:$0xff]  ;;  %v318_v38 = vand.u32 4294901760, %v317_v63 }
  0x1f   :  { %278 = vmatprep.subr.mxu1 %v1604_v4  ;;  %146 = vmatprep.subr.mxu0 %v1604_v4  ;;  %v1241_v60 = vand.u32 4294901760, %v94_v53 }
  0x20   :  { %284 = vmatpush1.msra.mxu1 %v283_v1  ;;  %148 = vmatpush1.msra.mxu0 %v1128_v9  ;;  %v93_v1 = vld [vmem:[%s1578_s3 + $0x88] sm:$0xff] }
  0x21   :  { %285 = vmatprep.subr.mxu1 %v1604_v4  ;;  %149 = vmatprep.subr.mxu0 %v1604_v4  ;;  %1629 = vst [vmem:[#allocation8_spill] sm:$0xff] %v1241_v60  ;;  %v1256_v43 = vand.u32 4294901760, %v93_v1  ;;  %v1266_v35 = vsub.f32 %v94_v53, %v1241_v60 }
  0x22   :  { %291 = vmatpush1.msra.mxu1 %v290_v42  ;;  %151 = vmatpush1.msra.mxu0 %v1140_v31  ;;  %v340_v42 = vsub.f32 %v1194_v13, %v1590_v58  ;;  %v1595_v58 = vand.u32 4294901760, %v1239_v52 }
  0x23   :  { %292 = vmatprep.subr.mxu1 %v1604_v4  ;;  %168 = vmatprep.subr.mxu0 %v1604_v4  ;;  %1631 = vst [vmem:[#allocation10_spill] sm:$0xff] %v1256_v43  ;;  %1632 = vst [vmem:[#allocation11_spill] sm:$0xff] %v1266_v35  ;;  %v1278_v33 = vsub.f32 %v93_v1, %v1256_v43 }
  0x24   :  { %298 = vmatpush1.msra.mxu1 %v297_v57  ;;  %170 = vmatpush2.msra.mxu0 %v1166_v46  ;;  %v347_v57 = vsub.f32 %v1209_v32, %v1592_v2  ;;  %v341_v63 = vand.u32 4294901760, %v340_v42  ;;  %v1596_v2 = vand.u32 4294901760, %v1254_v0  ;;  %v1599_v42 = vand.u32 4294901760, %v1266_v35 }
  0x25   :  { %299 = vmatprep.subr.mxu1 %v1604_v4  ;;  %171 = vmatprep.subr.mxu0 %v1604_v4  ;;  %1634 = vst [vmem:[#allocation13_spill] sm:$0xff] %v1278_v33 }
  0x26   :  { %305 = vmatpush1.msra.mxu1 %v304_v8  ;;  %173 = vmatpush2.msra.mxu0 %v1181_v59  ;;  %v354_v8 = vsub.f32 %v1224_v41, %v1594_v44  ;;  %v348_v53 = vand.u32 4294901760, %v347_v57  ;;  %v1288_v44 = vsub.f32 %v92_v50, %v1268_v37  ;;  %v1598_v57 = vand.u32 4294901760, %v1278_v33 }
  0x27   :  { %306 = vmatprep.subr.mxu1 %v1604_v4  ;;  %174 = vmatprep.subr.mxu0 %v1604_v4 }
  0x28   :  { %312 = vmatpush1.msra.mxu1 %v311_v34  ;;  %176 = vmatpush2.msra.mxu0 %v1196_v14  ;;  %v361_v34 = vsub.f32 %v1239_v52, %v1595_v58  ;;  %1635 = vst [vmem:[#allocation14_spill] sm:$0xff] %v1288_v44  ;;  %v355_v1 = vand.u32 4294901760, %v354_v8  ;;  %v375_v58 = vsub.f32 %v1266_v35, %v1599_v42 }
  0x29   :  { %313 = vmatprep.subr.mxu1 %v1604_v4  ;;  %177 = vmatprep.subr.mxu0 %v1604_v4 }
  0x2a   :  { %319 = vmatpush1.msra.mxu1 %v318_v38  ;;  %179 = vmatpush2.msra.mxu0 %v1211_v45  ;;  %v368_v38 = vsub.f32 %v1254_v0, %v1596_v2  ;;  %v362_v50 = vand.u32 4294901760, %v361_v34  ;;  %v382_v2 = vsub.f32 %v1278_v33, %v1598_v57  ;;  %v28_v33 = vsub.s32 1, %v23_v25 }
  0x2b   :  { %336 = vmatprep.subr.mxu1 %v1604_v4  ;;  %180 = vmatprep.subr.mxu0 %v1604_v4 }
  0x2c   :  { %342 = vmatpush2.msra.mxu1 %v341_v63  ;;  %182 = vmatpush2.msra.mxu0 %v1226_v15  ;;  %v1597_v63 = vand.u32 4294901760, %v1288_v44  ;;  %v369_v8 = vand.u32 4294901760, %v368_v38 }
  0x2d   :  { %343 = vmatprep.subr.mxu1 %v1604_v4  ;;  %183 = vmatprep.subr.mxu0 %v1604_v4 }
  0x2e   :  { %349 = vmatpush2.msra.mxu1 %v348_v53  ;;  %185 = vmatpush2.msra.mxu0 %v1241_v60  ;;  %v376_v53 = vand.u32 4294901760, %v375_v58  ;;  %v389_v34 = vsub.f32 %v1288_v44, %v1597_v63  ;;  %v18_v58 = vld [vmem:[%s1575_s0] sm:$0xff]  ;;  %v24_v44 = vsub.s32 0, %v23_v25 }
  0x2f   :  { %350 = vmatprep.subr.mxu1 %v1604_v4  ;;  %186 = vmatprep.subr.mxu0 %v1604_v4  ;;  %v1644_v25 = vld [vmem:[#allocation12_spill] sm:$0xff] }
  0x30   :  { %356 = vmatpush2.msra.mxu1 %v355_v1  ;;  %188 = vmatpush2.msra.mxu0 %v1256_v43  ;;  %v383_v1 = vand.u32 4294901760, %v382_v2  ;;  %v390_v38 = vand.u32 4294901760, %v389_v34  ;;  %v19_v2 = vld [vmem:[%s1575_s0 + $0x8] sm:$0xff] }
  0x31   :  { %357 = vmatprep.subr.mxu1 %v1604_v4  ;;  %189 = vmatprep.subr.mxu0 %v1604_v4  ;;  %v43_v41 = vmax.f32 %v19_v2, 0.0 }
  0x32   :  { %363 = vmatpush2.msra.mxu1 %v362_v50  ;;  %191 = vmatpush2.msra.mxu0 %v1268_v37  ;;  %v48_v50 = vand.u32 2147483647, %v18_v58 }
  0x33   :  { %364 = vmatprep.subr.mxu1 %v1604_v4  ;;  %400 = vmatprep.subr.mxu0 %v1604_v4 }
  0x34   :  { %370 = vmatpush2.msra.mxu1 %v369_v8  ;;  %v49_v8 = vand.u32 2147483647, %v19_v2 }
  0x35   :  { %371 = vmatprep.subr.mxu1 %v1604_v4 }
  0x36   :  { %377 = vmatpush2.msra.mxu1 %v376_v53  ;;  %v50_v53 = vsub.f32 0.0, %v48_v50  ;;  %v51_v34 = vsub.f32 0.0, %v49_v8  ;;  %v20_v50 = vld [vmem:[%s1577_s2] sm:$0x3]  ;;  %s931_s2 = smov [#allocation2]  }
  0x37   :  { %378 = vmatprep.subr.mxu1 %v1604_v4  ;;  %v25_v0 = vrot.slane %v20_v50, %v24_v44  ;;  %s882_s15 = sshll.u32 %s931_s2, 4  ;;  %s883_s15 = int_to_ptr.vmem [resolvable:$true] %s882_s15 }
  0x38   :  { %384 = vmatpush2.msra.mxu1 %v383_v1  ;;  %v52_v63 = vmul.f32 1.442695, %v50_v53  ;;  %v54_v57 = vmul.f32 1.442695, %v51_v34  ;;  %s906_s17 = scalar_lea.vmem %s883_s15, 128  ;;  %p911_p1 = scmp.lt.s32.totalorder %s883_s15, %s883_s15 }
  0x39   :  { %385 = vmatprep.subr.mxu1 %v1604_v4  ;;  %p907_p0 = scmp.ne.s32.totalorder %s883_s15, %s906_s17  ;;  %p912_p2 = scmp.lt.s32.totalorder %s906_s17, %s906_s17 }
  0x3a   :  { %391 = vmatpush2.msra.mxu1 %v390_v38  ;;  %898 = vpow2.f32 %v52_v63 }
  0x3b   :  { %522 = vmatprep.subr.mxu1 %v1604_v4  ;;  %900 = vpow2.f32 %v54_v57  ;;  %p913_p3 = por %p912_p2, %p911_p1 }
  0x3d   :  { %p914_p4 = pnand %p913_p3, %p907_p0 }
  0x47   :  { %v899_v1 = vpop.eup %898 }
  0x48   :  { %v901_v38 = vpop.eup %900  ;;  %v56_v42 = vadd.f32 1.0, %v899_v1  ;;  %v59_v24 = vmul.f32 -0.5, %v899_v1  ;;  %v62_v57 = vand.u32 2147483647, %v899_v1 }
  0x49   :  { %v65_v29 = vadd.f32 1.0, %v901_v38  ;;  %v68_v4 = vmul.f32 -0.5, %v901_v38  ;;  %v71_v37 = vand.u32 2147483647, %v901_v38 }
  0x4a   :  { %902 = vlog2.f32 %v56_v42  ;;  %v60_v53 = vadd.f32 1.0, %v59_v24  ;;  %v29_v42 = vrot.slane %v20_v50, %v28_v33  ;;  %vm1331_vm0 = vcmp.lt.f32.partialorder %v62_v57, 0.0004427343  ;;  %v1639_v57 = vld [vmem:[#allocation5_spill] sm:$0xff] }
  0x4b   :  { %904 = vlog2.f32 %v65_v29  ;;  %v69_v34 = vadd.f32 1.0, %v68_v4  ;;  %v42_v29 = vmax.f32 %v18_v58, 0.0  ;;  %vm72_vm4 = vcmp.lt.f32.partialorder %v71_v37, 0.0004427343 }
  0x4c   :  { %v61_v28 = vmul.f32 %v899_v1, %v60_v53 }
  0x4d   :  { %v70_v32 = vmul.f32 %v901_v38, %v69_v34  ;;  %v1640_v34 = vld [vmem:[#allocation8_spill] sm:$0xff] }
  0x57   :  { %v903_v63 = vpop.eup %902 }
  0x58   :  { %v905_v35 = vpop.eup %904  ;;  %v58_v52 = vmul.f32 0.6931472, %v903_v63 }
  0x59   :  { %v67_v60 = vmul.f32 0.6931472, %v905_v35 }
  0x5a   :  { %v64_v24 = vsel %vm1331_vm0, %v61_v28, %v58_v52  ;;  %v1643_v28 = vld [vmem:[#allocation7_spill] sm:$0xff] }
  0x5b   :  { %v73_v1 = vsel %vm72_vm4, %v70_v32, %v67_v60  ;;  %v1638_v32 = vmov 0.0  }
  0x7d   :  { %v32_v8 = vpop.permute.xlu0 %31 }
  0x7e   :  { %vm33_vm1 = vcmp.eq.s32.totalorder %v25_v0, %v32_v8  ;;  %vm34_vm5 = vcmp.eq.s32.totalorder %v29_v42, %v32_v8 }
  0x82   :  { %v37_v43 = vpop.permute.xlu0 %36 }
  0x83   :  { %vm38_vm2 = vcmp.eq.s32.totalorder %v25_v0, %v37_v43  ;;  %vm39_vm3 = vcmp.eq.s32.totalorder %v29_v42, %v37_v43  ;;  %v1641_v42 = vld [vmem:[#allocation6_spill] sm:$0xff] }
  0x84   :  { %vm40_vm6 = vmor %vm33_vm1, %vm38_vm2 }
  0x85   :  { %vm41_vm7 = vmor %vm34_vm5, %vm39_vm3  ;;  %v44_v4 = vsel %vm40_vm6, %v18_v58, 0.0 }
  0x86   :  { %v45_v33 = vsel %vm41_vm7, %v19_v2, 0.0  ;;  %v46_v44 = vsub.f32 %v42_v29, %v44_v4  ;;  %v1642_v29 = vld [vmem:[#allocation10_spill] sm:$0xff]  ;;  %v1645_v4 = vld [vmem:[#allocation9_spill] sm:$0xff] }
  0x87   :  { %v47_v50 = vsub.f32 %v43_v41, %v45_v33  ;;  %v1647_v33 = vld [vmem:[#allocation13_spill] sm:$0xff] }
  0x88   :  { %v74_v53 = vadd.f32 %v64_v24, %v46_v44  ;;  %v1646_v24 = vld [vmem:[#allocation11_spill] sm:$0xff] }
  0x89   :  { %v75_v63 = vadd.f32 %v73_v1, %v47_v50 }
  0x8a   :  { %v1337_v35 = vand.u32 4294901760, %v74_v53 }
  0x8b   :  { %v102_v38 = vsel %vm100_vm8, %v75_v63, 0 }
  0x8c   :  { %v1340_v43 = vsub.f32 %v74_v53, %v1337_v35  ;;  %v1342_v0 = vand.u32 4294901760, %v102_v38 }
  0x8e   :  { %393 = vmatprep.mubr.f32.mxu1 %v1342_v0  ;;  %v193_v37 = vsub.f32 %v102_v38, %v1342_v0  ;;  %v200_v52 = vand.u32 4294901760, %v1340_v43 }
  0x8f   :  { %395 = vmatmul.mubr.f32.vlgmr.msra.gmra.mxu1 %v1337_v35 }
  0x90   :  { %524 = vmatpush1.msra.mxu1 %v967_v5  ;;  %v194_v60 = vand.u32 4294901760, %v193_v37  ;;  %v201_v41 = vsub.f32 %v1340_v43, %v200_v52 }
  0x91   :  { %525 = vmatprep.subr.mxu1 %v1638_v32 }
  0x92   :  { %527 = vmatpush1.msra.mxu1 %v969_v6  ;;  %613 = vmatprep.mubr.f32.mxu1 %v194_v60  ;;  %v195_v58 = vsub.f32 %v193_v37, %v194_v60  ;;  %v202_v8 = vand.u32 4294901760, %v201_v41 }
  0x93   :  { %528 = vmatprep.subr.mxu1 %v1638_v32 }
  0x94   :  { %530 = vmatpush1.msra.mxu1 %v980_v10  ;;  %v196_v2 = vand.u32 4294901760, %v195_v58 }
  0x95   :  { %531 = vmatprep.subr.mxu1 %v1638_v32 }
  0x96   :  { %533 = vmatpush1.msra.mxu1 %v982_v11  ;;  %197 = vmatprep.mubr.f32.mxu0 %v196_v2 }
  0x97   :  { %534 = vmatprep.subr.mxu1 %v1638_v32  ;;  %203 = vmatmul.mubr.f32.vlgmr.msra.gmra.mxu0 %v202_v8 }
  0x98   :  { %403 = vmatpush1.msra.mxu0 %v997_v16  ;;  %536 = vmatpush1.msra.mxu1 %v985_v12 }
  0x99   :  { %404 = vmatprep.subr.mxu0 %v1638_v32  ;;  %514 = vmatprep.mubr.f32.mxu0 %v193_v37 }
  0x9a   :  { %537 = vmatprep.subr.mxu1 %v1638_v32  ;;  %407 = vmatpush1.msra.mxu0 %v1000_v17 }
  0x9b   :  { %539 = vmatpush1.msra.mxu1 %v1003_v18  ;;  %408 = vmatprep.subr.mxu0 %v1638_v32 }
  0x9c   :  { %540 = vmatprep.subr.mxu1 %v1638_v32  ;;  %411 = vmatpush1.msra.mxu0 %v1008_v20 }
  0x9d   :  { %542 = vmatpush1.msra.mxu1 %v1005_v19  ;;  %412 = vmatprep.subr.mxu0 %v1638_v32 }
  0x9e   :  { %543 = vmatprep.subr.mxu1 %v1638_v32  ;;  %415 = vmatpush1.msra.mxu0 %v1011_v21 }
  0x9f   :  { %545 = vmatpush1.msra.mxu1 %v1017_v23  ;;  %416 = vmatprep.subr.mxu0 %v1638_v32 }
  0xa0   :  { %546 = vmatprep.subr.mxu1 %v1638_v32  ;;  %419 = vmatpush1.msra.mxu0 %v1014_v22 }
  0xa1   :  { %548 = vmatpush1.msra.mxu1 %v1069_v47  ;;  %420 = vmatprep.subr.mxu0 %v1638_v32 }
  0xa2   :  { %549 = vmatprep.subr.mxu1 %v1638_v32  ;;  %423 = vmatpush1.msra.mxu0 %v1023_v26 }
  0xa3   :  { %551 = vmatpush1.msra.mxu1 %v1071_v48  ;;  %424 = vmatprep.subr.mxu0 %v1638_v32 }
  0xa4   :  { %552 = vmatprep.subr.mxu1 %v1638_v32  ;;  %427 = vmatpush1.msra.mxu0 %v1029_v30 }
  0xa5   :  { %554 = vmatpush1.msra.mxu1 %v1079_v51  ;;  %428 = vmatprep.subr.mxu0 %v1638_v32 }
  0xa6   :  { %555 = vmatprep.subr.mxu1 %v1638_v32  ;;  %431 = vmatpush1.msra.mxu0 %v1045_v36 }
  0xa7   :  { %557 = vmatpush1.msra.mxu1 %v1091_v56  ;;  %432 = vmatprep.subr.mxu0 %v1638_v32 }
  0xa8   :  { %558 = vmatprep.subr.mxu1 %v1638_v32  ;;  %435 = vmatpush1.msra.mxu0 %v1085_v54 }
  0xa9   :  { %560 = vmatpush1.msra.mxu1 %v1106_v62  ;;  %436 = vmatprep.subr.mxu0 %v1638_v32 }
  0xaa   :  { %561 = vmatprep.subr.mxu1 %v1638_v32  ;;  %439 = vmatpush1.msra.mxu0 %v1089_v55 }
  0xab   :  { %563 = vmatpush1.msra.mxu1 %v1121_v7  ;;  %440 = vmatprep.subr.mxu0 %v1638_v32 }
  0xac   :  { %564 = vmatprep.subr.mxu1 %v1638_v32  ;;  %443 = vmatpush1.msra.mxu0 %v1104_v61 }
  0xad   :  { %566 = vmatpush1.msra.mxu1 %v1128_v9  ;;  %444 = vmatprep.subr.mxu0 %v1638_v32 }
  0xae   :  { %567 = vmatprep.subr.mxu1 %v1638_v32  ;;  %447 = vmatpush1.msra.mxu0 %v1119_v3 }
  0xaf   :  { %569 = vmatpush1.msra.mxu1 %v1140_v31  ;;  %448 = vmatprep.subr.mxu0 %v1638_v32 }
  0xb0   :  { %586 = vmatprep.subr.mxu1 %v1638_v32  ;;  %451 = vmatpush1.msra.mxu0 %v1136_v27 }
  0xb1   :  { %588 = vmatpush2.msra.mxu1 %v1166_v46  ;;  %452 = vmatprep.subr.mxu0 %v1638_v32 }
  0xb2   :  { %589 = vmatprep.subr.mxu1 %v1638_v32  ;;  %455 = vmatpush1.msra.mxu0 %v1151_v39 }
  0xb3   :  { %591 = vmatpush2.msra.mxu1 %v1181_v59  ;;  %456 = vmatprep.subr.mxu0 %v1638_v32 }
  0xb4   :  { %592 = vmatprep.subr.mxu1 %v1638_v32  ;;  %459 = vmatpush1.msra.mxu0 %v1156_v40 }
  0xb5   :  { %594 = vmatpush2.msra.mxu1 %v1196_v14  ;;  %460 = vmatprep.subr.mxu0 %v1638_v32 }
  0xb6   :  { %595 = vmatprep.subr.mxu1 %v1638_v32  ;;  %463 = vmatpush1.msra.mxu0 %v1171_v49 }
  0xb7   :  { %597 = vmatpush2.msra.mxu1 %v1211_v45  ;;  %480 = vmatprep.subr.mxu0 %v1638_v32 }
  0xb8   :  { %598 = vmatprep.subr.mxu1 %v1638_v32  ;;  %483 = vmatpush2.msra.mxu0 %v1194_v13 }
  0xb9   :  { %600 = vmatpush2.msra.mxu1 %v1226_v15  ;;  %484 = vmatprep.subr.mxu0 %v1638_v32 }
  0xba   :  { %601 = vmatprep.subr.mxu1 %v1638_v32  ;;  %487 = vmatpush2.msra.mxu0 %v1639_v57 }
  0xbb   :  { %603 = vmatpush2.msra.mxu1 %v1640_v34  ;;  %488 = vmatprep.subr.mxu0 %v1638_v32 }
  0xbc   :  { %604 = vmatprep.subr.mxu1 %v1638_v32  ;;  %491 = vmatpush2.msra.mxu0 %v1641_v42 }
  0xbd   :  { %606 = vmatpush2.msra.mxu1 %v1642_v29  ;;  %492 = vmatprep.subr.mxu0 %v1638_v32 }
  0xbe   :  { %607 = vmatprep.subr.mxu1 %v1638_v32  ;;  %495 = vmatpush2.msra.mxu0 %v1643_v28 }
  0xbf   :  { %609 = vmatpush2.msra.mxu1 %v1644_v25  ;;  %496 = vmatprep.subr.mxu0 %v1638_v32 }
  0xc0   :  { %617 = vmatmul.mubr.f32.vlgmr.msra.gmra.mxu1 %v200_v52  ;;  %766 = vmatprep.subr.mxu1 %v1638_v32 }
  0xc1   :  { %499 = vmatpush2.msra.mxu0 %v1645_v4  ;;  %768 = vmatpush1.msra.mxu1 %v967_v5  ;;  %v1648_v5 = vld [vmem:[#allocation14_spill] sm:$0xff] }
  0xc2   :  { %855 = vmatprep.mubr.f32.mxu1 %v1342_v0  ;;  %500 = vmatprep.subr.mxu0 %v1638_v32 }
  0xc3   :  { %769 = vmatprep.subr.mxu1 %v1638_v32  ;;  %503 = vmatpush2.msra.mxu0 %v1646_v24 }
  0xc4   :  { %771 = vmatpush1.msra.mxu1 %v969_v6  ;;  %504 = vmatprep.subr.mxu0 %v1638_v32  ;;  %v1649_v6 = vand.u32 4294901760, %v997_v16  ;;  %v1653_v16 = vand.u32 4294901760, %v1014_v22  ;;  %v1659_v22 = vand.u32 4294901760, %v1104_v61  ;;  %v1670_v61 = vand.u32 4294901760, %v1646_v24 }
  0xc5   :  { %772 = vmatprep.subr.mxu1 %v1638_v32  ;;  %507 = vmatpush2.msra.mxu0 %v1647_v33 }
  0xc6   :  { %774 = vmatpush1.msra.mxu1 %v980_v10  ;;  %508 = vmatprep.subr.mxu0 %v1638_v32  ;;  %v1650_v10 = vand.u32 4294901760, %v1000_v17  ;;  %v1654_v17 = vand.u32 4294901760, %v1023_v26  ;;  %v1661_v26 = vand.u32 4294901760, %v1136_v27 }
  0xc7   :  { %775 = vmatprep.subr.mxu1 %v1638_v32  ;;  %511 = vmatpush2.msra.mxu0 %v1648_v5 }
  0xc8   :  { %777 = vmatpush1.msra.mxu1 %v982_v11  ;;  %517 = vmatmul.mubr.f32.vlgmr.msra.gmra.mxu0 %v1340_v43  ;;  %v1651_v11 = vand.u32 4294901760, %v1008_v20  ;;  %v1657_v20 = vand.u32 4294901760, %v1085_v54  ;;  %v1667_v54 = vand.u32 4294901760, %v1641_v42 }
  0xc9   :  { %622 = vmatprep.subr.mxu0 %v1638_v32  ;;  %778 = vmatprep.subr.mxu1 %v1638_v32 }
  0xca   :  { %626 = vmatpush1.msra.mxu0 %v1649_v6  ;;  %759 = vmatprep.mubr.f32.mxu0 %v1342_v0 }
  0xcb   :  { %780 = vmatpush1.msra.mxu1 %v985_v12  ;;  %627 = vmatprep.subr.mxu0 %v1638_v32  ;;  %v1652_v12 = vand.u32 4294901760, %v1011_v21  ;;  %v1658_v21 = vand.u32 4294901760, %v1089_v55  ;;  %v1668_v55 = vand.u32 4294901760, %v1643_v28 }
  0xcc   :  { %781 = vmatprep.subr.mxu1 %v1638_v32  ;;  %631 = vmatpush1.msra.mxu0 %v1650_v10 }
  0xcd   :  { %783 = vmatpush1.msra.mxu1 %v1003_v18  ;;  %632 = vmatprep.subr.mxu0 %v1638_v32  ;;  %v1655_v18 = vand.u32 4294901760, %v1029_v30  ;;  %v1662_v30 = vand.u32 4294901760, %v1151_v39 }
  0xce   :  { %784 = vmatprep.subr.mxu1 %v1638_v32  ;;  %636 = vmatpush1.msra.mxu0 %v1651_v11 }
  0xcf   :  { %786 = vmatpush1.msra.mxu1 %v1005_v19  ;;  %637 = vmatprep.subr.mxu0 %v1638_v32  ;;  %v1656_v19 = vand.u32 4294901760, %v1045_v36  ;;  %v1663_v36 = vand.u32 4294901760, %v1156_v40 }
  0xd0   :  { %787 = vmatprep.subr.mxu1 %v1638_v32  ;;  %641 = vmatpush1.msra.mxu0 %v1652_v12 }
  0xd1   :  { %789 = vmatpush1.msra.mxu1 %v1017_v23  ;;  %642 = vmatprep.subr.mxu0 %v1638_v32  ;;  %v1660_v23 = vand.u32 4294901760, %v1119_v3  ;;  %v1672_v3 = vand.u32 4294901760, %v1648_v5 }
  0xd2   :  { %790 = vmatprep.subr.mxu1 %v1638_v32  ;;  %646 = vmatpush1.msra.mxu0 %v1653_v16 }
  0xd3   :  { %792 = vmatpush1.msra.mxu1 %v1069_v47  ;;  %647 = vmatprep.subr.mxu0 %v1638_v32  ;;  %v1664_v47 = vand.u32 4294901760, %v1171_v49 }
  0xd4   :  { %793 = vmatprep.subr.mxu1 %v1638_v32  ;;  %651 = vmatpush1.msra.mxu0 %v1654_v17 }
  0xd5   :  { %795 = vmatpush1.msra.mxu1 %v1071_v48  ;;  %652 = vmatprep.subr.mxu0 %v1638_v32  ;;  %v1665_v48 = vand.u32 4294901760, %v1194_v13 }
  0xd6   :  { %796 = vmatprep.subr.mxu1 %v1638_v32  ;;  %656 = vmatpush1.msra.mxu0 %v1655_v18 }
  0xd7   :  { %798 = vmatpush1.msra.mxu1 %v1079_v51  ;;  %657 = vmatprep.subr.mxu0 %v1638_v32  ;;  %v1666_v51 = vand.u32 4294901760, %v1639_v57 }
  0xd8   :  { %799 = vmatprep.subr.mxu1 %v1638_v32  ;;  %661 = vmatpush1.msra.mxu0 %v1656_v19 }
  0xd9   :  { %801 = vmatpush1.msra.mxu1 %v1091_v56  ;;  %662 = vmatprep.subr.mxu0 %v1638_v32  ;;  %v1669_v56 = vand.u32 4294901760, %v1645_v4 }
  0xda   :  { %802 = vmatprep.subr.mxu1 %v1638_v32  ;;  %666 = vmatpush1.msra.mxu0 %v1657_v20 }
  0xdb   :  { %804 = vmatpush1.msra.mxu1 %v1106_v62  ;;  %667 = vmatprep.subr.mxu0 %v1638_v32  ;;  %v1671_v62 = vand.u32 4294901760, %v1647_v33 }
  0xdc   :  { %805 = vmatprep.subr.mxu1 %v1638_v32  ;;  %671 = vmatpush1.msra.mxu0 %v1658_v21 }
  0xdd   :  { %807 = vmatpush1.msra.mxu1 %v1121_v7  ;;  %672 = vmatprep.subr.mxu0 %v1638_v32 }
  0xde   :  { %808 = vmatprep.subr.mxu1 %v1638_v32  ;;  %676 = vmatpush1.msra.mxu0 %v1659_v22 }
  0xdf   :  { %810 = vmatpush1.msra.mxu1 %v1128_v9  ;;  %677 = vmatprep.subr.mxu0 %v1638_v32 }
  0xe0   :  { %811 = vmatprep.subr.mxu1 %v1638_v32  ;;  %681 = vmatpush1.msra.mxu0 %v1660_v23 }
  0xe1   :  { %813 = vmatpush1.msra.mxu1 %v1140_v31  ;;  %682 = vmatprep.subr.mxu0 %v1638_v32 }
  0xe2   :  { %830 = vmatprep.subr.mxu1 %v1638_v32  ;;  %686 = vmatpush1.msra.mxu0 %v1661_v26 }
  0xe3   :  { %832 = vmatpush2.msra.mxu1 %v1166_v46  ;;  %687 = vmatprep.subr.mxu0 %v1638_v32 }
  0xe4   :  { %833 = vmatprep.subr.mxu1 %v1638_v32  ;;  %691 = vmatpush1.msra.mxu0 %v1662_v30 }
  0xe5   :  { %835 = vmatpush2.msra.mxu1 %v1181_v59  ;;  %692 = vmatprep.subr.mxu0 %v1638_v32 }
  0xe6   :  { %836 = vmatprep.subr.mxu1 %v1638_v32  ;;  %696 = vmatpush1.msra.mxu0 %v1663_v36 }
  0xe7   :  { %838 = vmatpush2.msra.mxu1 %v1196_v14  ;;  %697 = vmatprep.subr.mxu0 %v1638_v32 }
  0xe8   :  { %839 = vmatprep.subr.mxu1 %v1638_v32  ;;  %701 = vmatpush1.msra.mxu0 %v1664_v47 }
  0xe9   :  { %841 = vmatpush2.msra.mxu1 %v1211_v45  ;;  %718 = vmatprep.subr.mxu0 %v1638_v32 }
  0xea   :  { %842 = vmatprep.subr.mxu1 %v1638_v32  ;;  %722 = vmatpush2.msra.mxu0 %v1665_v48 }
  0xeb   :  { %844 = vmatpush2.msra.mxu1 %v1226_v15  ;;  %723 = vmatprep.subr.mxu0 %v1638_v32 }
  0xec   :  { %845 = vmatprep.subr.mxu1 %v1638_v32  ;;  %727 = vmatpush2.msra.mxu0 %v1666_v51 }
  0xed   :  { %847 = vmatpush2.msra.mxu1 %v1640_v34  ;;  %728 = vmatprep.subr.mxu0 %v1638_v32 }
  0xee   :  { %848 = vmatprep.subr.mxu1 %v1638_v32  ;;  %732 = vmatpush2.msra.mxu0 %v1667_v54 }
  0xef   :  { %850 = vmatpush2.msra.mxu1 %v1642_v29  ;;  %733 = vmatprep.subr.mxu0 %v1638_v32 }
  0xf0   :  { %851 = vmatprep.subr.mxu1 %v1638_v32  ;;  %737 = vmatpush2.msra.mxu0 %v1668_v55 }
  0xf1   :  { %853 = vmatpush2.msra.mxu1 %v1644_v25  ;;  %738 = vmatprep.subr.mxu0 %v1638_v32 }
  0xf2   :  { %857 = vmatmul.mubr.f32.vlgmr.msra.gmra.mxu1 %v1337_v35  ;;  %742 = vmatpush2.msra.mxu0 %v1669_v56 }
  0xf3   :  { %743 = vmatprep.subr.mxu0 %v1638_v32 }
  0xf4   :  { %747 = vmatpush2.msra.mxu0 %v1670_v61 }
  0xf5   :  { %748 = vmatprep.subr.mxu0 %v1638_v32 }
  0xf6   :  { %752 = vmatpush2.msra.mxu0 %v1671_v62 }
  0xf7   :  { %753 = vmatprep.subr.mxu0 %v1638_v32 }
  0xf8   :  { %757 = vmatpush2.msra.mxu0 %v1672_v3 }
  0xf9   :  { %761 = vmatmul.mubr.f32.vlgmr.msra.gmra.mxu0 %v1337_v35 }
 0x14f   :  { %v396_v7 = vpop.f32.mrf.mxu1 }
 0x151   :  { %v398_v9 = vpop.f32.mrf.mxu1 }
 0x157   :  { %v204_v15 = vpop.f32.mrf.mxu0 }
 0x158   :  { %v397_v27 = vadd.f32 %v396_v7, %v204_v15 }
 0x159   :  { %v206_v31 = vpop.f32.mrf.mxu0 }
 0x180   :  { %v618_v39 = vpop.f32.mrf.mxu1 }
 0x182   :  { %v620_v40 = vpop.f32.mrf.mxu1 }
 0x188   :  { %v518_v45 = vpop.f32.mrf.mxu0 }
 0x189   :  { %v519_v59 = vadd.f32 %v518_v45, %v397_v27 }
 0x18a   :  { %v520_v46 = vpop.f32.mrf.mxu0 }
 0x18b   :  { %v619_v14 = vadd.f32 %v618_v39, %v519_v59 }
 0x1b2   :  { %v858_v49 = vpop.f32.mrf.mxu1 }
 0x1b4   :  { %v860_v13 = vpop.f32.mrf.mxu1 }
 0x1b9   :  { %v762_v44 = vpop.f32.mrf.mxu0 }
 0x1ba   :  { %v763_v1 = vadd.f32 %v762_v44, %v619_v14 }
 0x1bb   :  { %v764_v50 = vpop.f32.mrf.mxu0 }
 0x1bc   :  { %v859_v53 = vadd.f32 %v858_v49, %v763_v1 }
 0x1be   :  { %v863_v63 = vsel %vm862_vm9, %v859_v53, 0.0 }
 0x1bf   :  { %864 = vadd.xlane.f32.xlu1 %v863_v63 }
 0x248   :  { %v865_v35 = vpop.xlane.xlu1 %864 }
 0x249   :  { %v866_v38 = vrot.slane %v865_v35, 4 }
 0x24b   :  { %v867_v43 = vadd.f32 %v866_v38, %v865_v35 }
 0x24d   :  { %v868_v0 = vrot.slane %v867_v43, 2 }
 0x24f   :  { %v869_v37 = vadd.f32 %v868_v0, %v867_v43 }
 0x251   :  { %v870_v52 = vrot.slane %v869_v37, 1 }
 0x253   :  { %v871_v60 = vadd.f32 %v870_v52, %v869_v37 }
 0x255   :  { %890 = vpush %v871_v60 }
 0x286   :  { %s891_s16 = spop %890 }
 0x287   :  { %v873_v32 = vstv %s891_s16 }
 0x288   :  { %875 = vst [vmem:[#allocation2] sm:$0xff] %v873_v32 }
 0x289   :  { %917 = shalt.err (!%p914_p4)
}
 0x28a   :  { %885 = dma.vmem_to_hbm [thread:$0]  %s883_s15, 128, %s1579_s4, [#allocation3]  }
 0x28b   :  { %926 = dma.done.wait [#allocation3], 128  }
 0x28c   :  { %927 = vsyncadd [#allocation3], 4294967168 }
 0x28d   :  { %889 = vsyncpa [#allocation3], 1 }

</bundles_post_ra>
